<compile_context>
chip_gen: v7x
topology: tpu7x:2x2x1
jax: 0.10.0
libtpu: 0.0.40
codegen_flags: <defaults>
</compile_context>

<pallas_src>
import functools

import jax
import jax.numpy as jnp
from jax.experimental import pallas as pl
from jax.experimental.pallas import tpu as pltpu

_INV_SQRT2 = 0.7071067811865476
_BN_EPS = 1e-5
_LANE = 128
# <= physical VMEM on all of v5e/v6e (128 MiB) and v7x (64 MiB); per-step usage here is
# only a few MiB so this just gives the pipeliner headroom.
_VMEM_LIMIT = 48 * 1024 * 1024

_CPARAMS = pltpu.CompilerParams(
    dimension_semantics=("parallel",),          # megacore sharding on v7x
    vmem_limit_bytes=_VMEM_LIMIT,
)


def _rup(c, m=_LANE):
    return ((c + m - 1) // m) * m


def _div_leq(n, target):
    """Largest divisor of n that is <= target (>= 1)."""
    target = max(1, min(n, target))
    for d in range(target, 0, -1):
        if n % d == 0:
            return d
    return 1


# ---------------------------------------------------------------------------
# Kernel 1: ConvTranspose2d(k=2, s=2) as a lane-dense matmul (bf16 MXU, f32 acc)
# ---------------------------------------------------------------------------
def _deconv_kernel(x_ref, w_ref, b_ref, o_ref):
    # x_ref: (1, R, Cinp) f32; w_ref: (Cinp, 4*Cp) bf16; b_ref: (1, 4*Cp) f32
    # o_ref: (1, R, 4*Cp) f32, columns ordered (di, dj, c) -> 512 dense lanes.
    cp = o_ref.shape[-1] // 4
    x = x_ref[0].astype(jnp.bfloat16)
    for g in range(4):  # one 128-lane-aligned column group per (di, dj) tap
        o_ref[0, :, g * cp:(g + 1) * cp] = (
            jnp.dot(x, w_ref[:, g * cp:(g + 1) * cp],
                    preferred_element_type=jnp.float32)
            + b_ref[0:1, g * cp:(g + 1) * cp])


def conv_transpose_2x2(x_nhwc, w_iokk, b):
    """x_nhwc: (N,H,W,Cin); w_iokk: (Cin,Cout,2,2) (PyTorch ConvTranspose2d layout).

    Returns the channel-padded upsampled activation (N, 2H, 2W, Cp)."""
    n, h, w, cin = x_nhwc.shape
    cout = w_iokk.shape[1]
    cinp, cp = _rup(cin), _rup(cout)

    x = jnp.pad(x_nhwc, ((0, 0), (0, 0), (0, 0), (0, cinp - cin)))
    x = x.reshape(n, h * w, cinp)
    wt = jnp.transpose(w_iokk, (0, 2, 3, 1))                       # (Cin, di, dj, Cout)
    wt = jnp.pad(wt, ((0, cinp - cin), (0, 0), (0, 0), (0, cp - cout)))
    wt = wt.reshape(cinp, 4 * cp).astype(jnp.bfloat16)
    b4 = jnp.tile(jnp.pad(b, (0, cp - cout)), 4).reshape(1, 4 * cp).astype(jnp.float32)

    out = pl.pallas_call(
        _deconv_kernel,
        out_shape=jax.ShapeDtypeStruct((n, h * w, 4 * cp), jnp.float32),
        grid=(n,),
        in_specs=[pl.BlockSpec((1, h * w, cinp), lambda i: (i, 0, 0)),
                  pl.BlockSpec((cinp, 4 * cp), lambda i: (0, 0)),
                  pl.BlockSpec((1, 4 * cp), lambda i: (0, 0))],
        out_specs=pl.BlockSpec((1, h * w, 4 * cp), lambda i: (i, 0, 0)),
        compiler_params=_CPARAMS,
    )(x, wt, b4)

    # TODO(synk): fold this un-interleave (inverse space-to-depth) into the kernel's
    # out_specs so the (N, 2H, 2W, Cp) layout is written straight from VMEM.
    out = out.reshape(n, h, w, 2, 2, cp).transpose(0, 1, 3, 2, 4, 5)
    return out.reshape(n, 2 * h, 2 * w, cp)


# ---------------------------------------------------------------------------
# Kernel 2 (pass 1): Conv2d(3x3, pad=1) via im2col -> single MXU matmul,
#                    plus per-image BN partial sums (sum / sum-of-squares).
# ---------------------------------------------------------------------------
def _conv3x3_im2col_kernel(xp_ref, w_ref, y_ref, stat_ref, col_ref, *, rh):
    # xp_ref : (1, H+2, W+2, Cinp) f32  spatially + channel padded image
    # w_ref  : (9*Cinp, Cp) bf16        im2col-packed weights
    # y_ref  : (1, H*W, Cp) f32         pre-BN conv output
    # stat_ref: (1, 2, Cp) f32          per-image [sum ; sumsq]
    # col_ref: (rh*W, 9*Cinp) bf16      im2col scratch for one row chunk
    _, hp, wp, cin = xp_ref.shape
    h, w = hp - 2, wp - 2
    cp = y_ref.shape[-1]
    ssum = jnp.zeros((1, cp), jnp.float32)
    ssq = jnp.zeros((1, cp), jnp.float32)
    for blk in range(h // rh):                      # static unroll; keeps vreg pressure low
        h0 = blk * rh
        for kh in range(3):
            for kw in range(3):
                k = kh * 3 + kw
                patch = xp_ref[0, h0 + kh:h0 + kh + rh, kw:kw + w, :]
                col_ref[:, k * cin:(k + 1) * cin] = (
                    patch.reshape(rh * w, cin).astype(jnp.bfloat16))
        yc = jnp.dot(col_ref[...], w_ref[...],
                     preferred_element_type=jnp.float32)          # K = 9*Cinp
        y_ref[0, h0 * w:(h0 + rh) * w, :] = yc
        ssum = ssum + jnp.sum(yc, axis=0, keepdims=True)
        ssq = ssq + jnp.sum(yc * yc, axis=0, keepdims=True)
    stat_ref[0, 0:1, :] = ssum
    stat_ref[0, 1:2, :] = ssq


def conv3x3_pass1(ap, w_oihw):
    """ap: (N, H+2, W+2, Cinp) padded activation; w_oihw: (Cout,Cin,3,3)."""
    n, hp, wp, cinp = ap.shape
    h, w = hp - 2, wp - 2
    cout, cin = w_oihw.shape[0], w_oihw.shape[1]
    cp = _rup(cout)

    w9 = jnp.transpose(w_oihw, (2, 3, 1, 0))                       # (kh, kw, Cin, Cout)
    w9 = jnp.pad(w9, ((0, 0), (0, 0), (0, cinp - cin), (0, cp - cout)))
    w9 = w9.reshape(9 * cinp, cp).astype(jnp.bfloat16)
    rh = _div_leq(h, max(1, 256 // w))                             # rows per im2col chunk

    y, stats = pl.pallas_call(
        functools.partial(_conv3x3_im2col_kernel, rh=rh),
        out_shape=(jax.ShapeDtypeStruct((n, h * w, cp), jnp.float32),
                   jax.ShapeDtypeStruct((n, 2, cp), jnp.float32)),
        grid=(n,),
        in_specs=[pl.BlockSpec((1, hp, wp, cinp), lambda i: (i, 0, 0, 0)),
                  pl.BlockSpec((9 * cinp, cp), lambda i: (0, 0))],
        out_specs=(pl.BlockSpec((1, h * w, cp), lambda i: (i, 0, 0)),
                   pl.BlockSpec((1, 2, cp), lambda i: (i, 0, 0))),
        scratch_shapes=[pltpu.VMEM((rh * w, 9 * cinp), jnp.bfloat16)],
        compiler_params=_CPARAMS,
    )(ap, w9)
    return y, stats


def _bn_affine(stats, gamma, beta, count):
    """Finalize global BN stats (tiny per-channel math in plain JAX)."""
    cp = stats.shape[-1]
    s = jnp.sum(stats, axis=0)                                     # (2, Cp) over images
    mean = s[0] / count
    var = jnp.maximum(s[1] / count - mean * mean, 0.0)             # biased (training BN)
    g = jnp.pad(gamma, (0, cp - gamma.shape[0]))
    bt = jnp.pad(beta, (0, cp - beta.shape[0]))
    scale = g * jax.lax.rsqrt(var + _BN_EPS)
    shift = bt - mean * scale
    return (scale.reshape(1, cp).astype(jnp.float32),
            shift.reshape(1, cp).astype(jnp.float32))


# ---------------------------------------------------------------------------
# Kernel 3 (pass 2): folded BN affine + exact GELU.
#   _pad variant writes into a zero spatial border (input of the next conv stage).
# ---------------------------------------------------------------------------
def _bn_gelu_pad_kernel(y_ref, sc_ref, sh_ref, o_ref, *, rh):
    _, hp, wp, cp = o_ref.shape
    h, w = hp - 2, wp - 2
    sc = sc_ref[...]
    sh = sh_ref[...]
    o_ref[...] = jnp.zeros(o_ref.shape, o_ref.dtype)               # zero border (splat)
    for blk in range(h // rh):
        h0 = blk * rh
        y = y_ref[0, h0 * w:(h0 + rh) * w, :] * sc + sh
        g = 0.5 * y * (1.0 + jax.lax.erf(y * _INV_SQRT2))
        o_ref[0, 1 + h0:1 + h0 + rh, 1:w + 1, :] = g.reshape(rh, w, cp)


def _bn_gelu_kernel(y_ref, sc_ref, sh_ref, o_ref, *, rows):
    r_total = y_ref.shape[1]
    sc = sc_ref[...]
    sh = sh_ref[...]
    for blk in range(r_total // rows):
        r0 = blk * rows
        y = y_ref[0, r0:r0 + rows, :] * sc + sh
        o_ref[0, r0:r0 + rows, :] = 0.5 * y * (1.0 + jax.lax.erf(y * _INV_SQRT2))


def bn_gelu_pad(y, scale, shift, h, w):
    n, _, cp = y.shape
    rh = _div_leq(h, max(1, 256 // w))
    return pl.pallas_call(
        functools.partial(_bn_gelu_pad_kernel, rh=rh),
        out_shape=jax.ShapeDtypeStruct((n, h + 2, w + 2, cp), jnp.float32),
        grid=(n,),
        in_specs=[pl.BlockSpec((1, h * w, cp), lambda i: (i, 0, 0)),
                  pl.BlockSpec((1, cp), lambda i: (0, 0)),
                  pl.BlockSpec((1, cp), lambda i: (0, 0))],
        out_specs=pl.BlockSpec((1, h + 2, w + 2, cp), lambda i: (i, 0, 0, 0)),
        compiler_params=_CPARAMS,
    )(y, scale, shift)


def bn_gelu(y, scale, shift):
    n, r, cp = y.shape
    rows = _div_leq(r, 256)
    return pl.pallas_call(
        functools.partial(_bn_gelu_kernel, rows=rows),
        out_shape=jax.ShapeDtypeStruct((n, r, cp), jnp.float32),
        grid=(n,),
        in_specs=[pl.BlockSpec((1, r, cp), lambda i: (i, 0, 0)),
                  pl.BlockSpec((1, cp), lambda i: (0, 0)),
                  pl.BlockSpec((1, cp), lambda i: (0, 0))],
        out_specs=pl.BlockSpec((1, r, cp), lambda i: (i, 0, 0)),
        compiler_params=_CPARAMS,
    )(y, scale, shift)


# ---------------------------------------------------------------------------
# UnetUp forward
# ---------------------------------------------------------------------------
def unet_up_forward(x_nchw, skip_nchw, params):
    x = jnp.concatenate([x_nchw, skip_nchw], axis=1)               # cat channels (NCHW)
    h = jnp.transpose(x, (0, 2, 3, 1))                             # -> NHWC
    up = conv_transpose_2x2(h, params["ct_w"], params["ct_b"])     # (N, 2H, 2W, Cp)
    n, h2, w2, cp = up.shape
    cout = params["ct_b"].shape[0]
    count = float(n * h2 * w2)

    # spatial pad once for the first conv stage; later stages get the pad fused
    # into their pass-2 kernel.
    a = jnp.pad(up, ((0, 0), (1, 1), (1, 1), (0, 0)))
    stages = [params[f"{blk}_{cv}"] for blk in ("rb1", "rb2") for cv in ("c1", "c2")]
    out = None
    for si, p in enumerate(stages):
        # Conv bias is omitted: training-mode BN mean-subtraction cancels it exactly.
        y, stats = conv3x3_pass1(a, p["w"])
        scale, shift = _bn_affine(stats, p["gamma"], p["beta"], count)
        if si + 1 < len(stages):
            a = bn_gelu_pad(y, scale, shift, h2, w2)
        else:
            out = bn_gelu(y, scale, shift)

    out = out.reshape(n, h2, w2, cp)[:, :, :, :cout]
    return jnp.transpose(out, (0, 3, 1, 2))                        # back to NCHW


def init_params(key, in_ch, out_ch):
    ks = jax.random.split(key, 12)
    p = {
        "ct_w": 0.1 * jax.random.normal(ks[0], (in_ch, out_ch, 2, 2), jnp.float32),
        "ct_b": 0.1 * jax.random.normal(ks[1], (out_ch,), jnp.float32),
    }
    i = 2
    for blk in ("rb1", "rb2"):
        for cv in ("c1", "c2"):
            p[f"{blk}_{cv}"] = dict(
                w=0.1 * jax.random.normal(ks[i], (out_ch, out_ch, 3, 3), jnp.float32),
                b=0.1 * jax.random.normal(ks[i + 1], (out_ch,), jnp.float32),
                gamma=jnp.ones((out_ch,), jnp.float32),            # PyTorch BN init
                beta=jnp.zeros((out_ch,), jnp.float32),
            )
            i += 2
    return p


# ---------------------------------------------------------------------------
# Pure-JAX reference (same math, via XLA, f32 HIGHEST) for a correctness check
# ---------------------------------------------------------------------------
def _ref_conv_stage(x_nhwc, w_oihw, b, gamma, beta):
    w_hwio = jnp.transpose(w_oihw, (2, 3, 1, 0))
    y = jax.lax.conv_general_dilated(
        x_nhwc, w_hwio, window_strides=(1, 1), padding="SAME",
        dimension_numbers=("NHWC", "HWIO", "NHWC"),
        precision=jax.lax.Precision.HIGHEST,
    ) + b
    mean = y.mean(axis=(0, 1, 2), keepdims=True)
    var = ((y - mean) ** 2).mean(axis=(0, 1, 2), keepdims=True)
    yh = (y - mean) / jnp.sqrt(var + _BN_EPS) * gamma + beta
    return jax.nn.gelu(yh, approximate=False)


def ref_forward(x_nchw, skip_nchw, params):
    xc = jnp.concatenate([x_nchw, skip_nchw], axis=1)
    h = jnp.transpose(xc, (0, 2, 3, 1))
    t = jnp.einsum("nhwc,coij->nhiwjo", h, params["ct_w"],
                   precision=jax.lax.Precision.HIGHEST)
    n, hh, _, ww, _, co = t.shape
    h = t.reshape(n, 2 * hh, 2 * ww, co) + params["ct_b"]
    for blk in ("rb1", "rb2"):
        for cv in ("c1", "c2"):
            p = params[f"{blk}_{cv}"]
            h = _ref_conv_stage(h, p["w"], p["b"], p["gamma"], p["beta"])
    return jnp.transpose(h, (0, 3, 1, 2))


if __name__ == "__main__":
    key = jax.random.PRNGKey(0)
    kx, ksk, kp = jax.random.split(key, 3)

    N, Cx, Cs, H, W = 2, 4, 4, 16, 16        # x and skip each contribute 4 channels
    in_channels, out_channels = Cx + Cs, 4   # UnetUp(in_channels=8, out_channels=4)

    x = jax.random.normal(kx, (N, Cx, H, W), jnp.float32)
    skip = jax.random.normal(ksk, (N, Cs, H, W), jnp.float32)
    params = init_params(kp, in_channels, out_channels)

    out = jax.block_until_ready(unet_up_forward(x, skip, params))
    assert out.shape == (N, out_channels, 2 * H, 2 * W), out.shape

    ref = jax.block_until_ready(ref_forward(x, skip, params))
    max_err = float(jnp.max(jnp.abs(out - ref)))
    assert bool(jnp.allclose(out, ref, atol=5e-2, rtol=5e-2)), f"max abs err {max_err}"

    print("KERNEL_OK")
</pallas_src>

<mosaic_0001>
module attributes {stable_mosaic.version = 11 : i64} {
  func.func @_deconv_kernel(%arg0: i32, %arg1: memref<1x256x128xf32, #tpu.memory_space<vmem>>, %arg2: memref<128x512xbf16, #tpu.memory_space<vmem>>, %arg3: memref<1x512xf32, #tpu.memory_space<vmem>>, %arg4: memref<1x256x512xf32, #tpu.memory_space<vmem>>) attributes {dimension_semantics = [#tpu.dimension_semantics<parallel>], iteration_bounds = array<i64: 2>, scalar_prefetch = 0 : i64, scratch_operands = 0 : i64, tpu.core_type = #tpu.core_type<tc>, window_params = [{transform_indices = @transform_0, window_bounds = array<i64: 1, 256, 128>}, {pipeline_mode = #tpu.pipeline_mode<synchronous>, transform_indices = @transform_1, window_bounds = array<i64: 128, 512>}, {pipeline_mode = #tpu.pipeline_mode<synchronous>, transform_indices = @transform_2, window_bounds = array<i64: 1, 512>}, {transform_indices = @transform_3, window_bounds = array<i64: 1, 256, 512>}]} {
    %c0 = arith.constant 0 : index
    %c0_0 = arith.constant 0 : index
    %c0_1 = arith.constant 0 : index
    %0 = vector.load %arg1[%c0, %c0_0, %c0_1] : memref<1x256x128xf32, #tpu.memory_space<vmem>>, vector<1x256x128xf32>
    %1 = vector.shape_cast %0 : vector<1x256x128xf32> to vector<256x128xf32>
    %2 = arith.truncf %1 : vector<256x128xf32> to vector<256x128xbf16>
    %c0_2 = arith.constant 0 : index
    %c0_3 = arith.constant 0 : index
    %3 = vector.load %arg2[%c0_2, %c0_3] : memref<128x512xbf16, #tpu.memory_space<vmem>>, vector<128x128xbf16>
    %cst = arith.constant dense<0.000000e+00> : vector<256x128xf32>
    %4 = tpu.matmul %2, %3, %cst {dimension_numbers = #tpu.dot_dimension_numbers<[1], [0], [0], [1], [0, 0, 1, 1], [], []>} : vector<256x128xbf16>, vector<128x128xbf16>, vector<256x128xf32> -> vector<256x128xf32>
    %c0_4 = arith.constant 0 : index
    %c0_5 = arith.constant 0 : index
    %5 = vector.load %arg3[%c0_4, %c0_5] : memref<1x512xf32, #tpu.memory_space<vmem>>, vector<1x128xf32>
    %6 = vector.broadcast %5 : vector<1x128xf32> to vector<256x128xf32>
    %7 = arith.addf %4, %6 : vector<256x128xf32>
    %c0_6 = arith.constant 0 : index
    %c0_7 = arith.constant 0 : index
    %c0_8 = arith.constant 0 : index
    %8 = vector.load %arg4[%c0_6, %c0_7, %c0_8] : memref<1x256x512xf32, #tpu.memory_space<vmem>>, vector<1x256x128xf32>
    %9 = vector.shape_cast %8 : vector<1x256x128xf32> to vector<256x128xf32>
    %10 = vector.shape_cast %7 : vector<256x128xf32> to vector<1x256x128xf32>
    tpu.vector_store %arg4[%c0_6, %c0_7, %c0_8], %10 {strides = array<i32>} : memref<1x256x512xf32, #tpu.memory_space<vmem>>, vector<1x256x128xf32>,
    %c0_9 = arith.constant 0 : index
    %c128 = arith.constant 128 : index
    %11 = vector.load %arg2[%c0_9, %c128] : memref<128x512xbf16, #tpu.memory_space<vmem>>, vector<128x128xbf16>
    %cst_10 = arith.constant dense<0.000000e+00> : vector<256x128xf32>
    %12 = tpu.matmul %2, %11, %cst_10 {dimension_numbers = #tpu.dot_dimension_numbers<[1], [0], [0], [1], [0, 0, 1, 1], [], []>} : vector<256x128xbf16>, vector<128x128xbf16>, vector<256x128xf32> -> vector<256x128xf32>
    %c0_11 = arith.constant 0 : index
    %c128_12 = arith.constant 128 : index
    %13 = vector.load %arg3[%c0_11, %c128_12] : memref<1x512xf32, #tpu.memory_space<vmem>>, vector<1x128xf32>
    %14 = vector.broadcast %13 : vector<1x128xf32> to vector<256x128xf32>
    %15 = arith.addf %12, %14 : vector<256x128xf32>
    %c0_13 = arith.constant 0 : index
    %c0_14 = arith.constant 0 : index
    %c128_15 = arith.constant 128 : index
    %16 = vector.load %arg4[%c0_13, %c0_14, %c128_15] : memref<1x256x512xf32, #tpu.memory_space<vmem>>, vector<1x256x128xf32>
    %17 = vector.shape_cast %16 : vector<1x256x128xf32> to vector<256x128xf32>
    %18 = vector.shape_cast %15 : vector<256x128xf32> to vector<1x256x128xf32>
    tpu.vector_store %arg4[%c0_13, %c0_14, %c128_15], %18 {strides = array<i32>} : memref<1x256x512xf32, #tpu.memory_space<vmem>>, vector<1x256x128xf32>,
    %c0_16 = arith.constant 0 : index
    %c256 = arith.constant 256 : index
    %19 = vector.load %arg2[%c0_16, %c256] : memref<128x512xbf16, #tpu.memory_space<vmem>>, vector<128x128xbf16>
    %cst_17 = arith.constant dense<0.000000e+00> : vector<256x128xf32>
    %20 = tpu.matmul %2, %19, %cst_17 {dimension_numbers = #tpu.dot_dimension_numbers<[1], [0], [0], [1], [0, 0, 1, 1], [], []>} : vector<256x128xbf16>, vector<128x128xbf16>, vector<256x128xf32> -> vector<256x128xf32>
    %c0_18 = arith.constant 0 : index
    %c256_19 = arith.constant 256 : index
    %21 = vector.load %arg3[%c0_18, %c256_19] : memref<1x512xf32, #tpu.memory_space<vmem>>, vector<1x128xf32>
    %22 = vector.broadcast %21 : vector<1x128xf32> to vector<256x128xf32>
    %23 = arith.addf %20, %22 : vector<256x128xf32>
    %c0_20 = arith.constant 0 : index
    %c0_21 = arith.constant 0 : index
    %c256_22 = arith.constant 256 : index
    %24 = vector.load %arg4[%c0_20, %c0_21, %c256_22] : memref<1x256x512xf32, #tpu.memory_space<vmem>>, vector<1x256x128xf32>
    %25 = vector.shape_cast %24 : vector<1x256x128xf32> to vector<256x128xf32>
    %26 = vector.shape_cast %23 : vector<256x128xf32> to vector<1x256x128xf32>
    tpu.vector_store %arg4[%c0_20, %c0_21, %c256_22], %26 {strides = array<i32>} : memref<1x256x512xf32, #tpu.memory_space<vmem>>, vector<1x256x128xf32>,
    %c0_23 = arith.constant 0 : index
    %c384 = arith.constant 384 : index
    %27 = vector.load %arg2[%c0_23, %c384] : memref<128x512xbf16, #tpu.memory_space<vmem>>, vector<128x128xbf16>
    %cst_24 = arith.constant dense<0.000000e+00> : vector<256x128xf32>
    %28 = tpu.matmul %2, %27, %cst_24 {dimension_numbers = #tpu.dot_dimension_numbers<[1], [0], [0], [1], [0, 0, 1, 1], [], []>} : vector<256x128xbf16>, vector<128x128xbf16>, vector<256x128xf32> -> vector<256x128xf32>
    %c0_25 = arith.constant 0 : index
    %c384_26 = arith.constant 384 : index
    %29 = vector.load %arg3[%c0_25, %c384_26] : memref<1x512xf32, #tpu.memory_space<vmem>>, vector<1x128xf32>
    %30 = vector.broadcast %29 : vector<1x128xf32> to vector<256x128xf32>
    %31 = arith.addf %28, %30 : vector<256x128xf32>
    %c0_27 = arith.constant 0 : index
    %c0_28 = arith.constant 0 : index
    %c384_29 = arith.constant 384 : index
    %32 = vector.load %arg4[%c0_27, %c0_28, %c384_29] : memref<1x256x512xf32, #tpu.memory_space<vmem>>, vector<1x256x128xf32>
    %33 = vector.shape_cast %32 : vector<1x256x128xf32> to vector<256x128xf32>
    %34 = vector.shape_cast %31 : vector<256x128xf32> to vector<1x256x128xf32>
    tpu.vector_store %arg4[%c0_27, %c0_28, %c384_29], %34 {strides = array<i32>} : memref<1x256x512xf32, #tpu.memory_space<vmem>>, vector<1x256x128xf32>,
    return
  }
  func.func @transform_0(%arg0: i32) -> (i32, i32, i32) {
    %c0_i32 = arith.constant 0 : i32
    %c0_i32_0 = arith.constant 0 : i32
    %c0_i32_1 = arith.constant 0 : i32
    return %arg0, %c0_i32, %c0_i32_0 : i32, i32, i32
  }
  func.func @transform_1(%arg0: i32) -> (i32, i32) {
    %c0_i32 = arith.constant 0 : i32
    %c0_i32_0 = arith.constant 0 : i32
    %c0_i32_1 = arith.constant 0 : i32
    return %c0_i32, %c0_i32_0 : i32, i32
  }
  func.func @transform_2(%arg0: i32) -> (i32, i32) {
    %c0_i32 = arith.constant 0 : i32
    %c0_i32_0 = arith.constant 0 : i32
    %c0_i32_1 = arith.constant 0 : i32
    return %c0_i32, %c0_i32_0 : i32, i32
  }
  func.func @transform_3(%arg0: i32) -> (i32, i32, i32) {
    %c0_i32 = arith.constant 0 : i32
    %c0_i32_0 = arith.constant 0 : i32
    %c0_i32_1 = arith.constant 0 : i32
    return %arg0, %c0_i32, %c0_i32_0 : i32, i32, i32
  }
}

</mosaic_0001>

<bundles_post_ra>
// kernel: tpu_custom_call.1
= control target key start
LH: loop header
LB: loop body
LE: loop exit
PB: predicated region body
PF: predicated region fallthrough
CT: control target
= control target key end

     0   :  { %8 = vsyncpa [#allocation3], 0  ;;  %s2571_s0 = inlined_call_operand.hbm [shape: f32[2,256,128], index: 0, kind: input, shape index: {}]   ;;  %s2572_s1 = inlined_call_operand.hbm [shape: bf16[128,512], index: 1, kind: input, shape index: {}]   ;;  %s2573_s2 = inlined_call_operand.vmem [shape: f32[1,512], index: 2, kind: input, shape index: {}]   ;;  %s2574_s3 = inlined_call_operand.hbm [shape: f32[2,256,512], index: 3, kind: output, shape index: {}]  }
   0x1   :  { %10 = vsyncpa [#allocation3 + $0x1], 0 }
   0x2   :  { %11 = vsyncpa [#allocation6], 0 }
   0x3   :  { %12 = vsyncpa [#allocation4], 0 }
   0x4   :  { %14 = vsyncpa [#allocation4 + $0x1], 0  ;;  %s2002_s12 = smov 0   ;;  %s2004_s13 = smov 0  }
   0x5   :  { %s2006_s14 = smov 0   ;;  %s2008_s15 = smov 0  }
   0x6 LB: > { %s2023_s16 = sadd.s32 4294967295, %s1971_s15   ;;  %s1406_s17 = sadd.s32 4294967294, %s1971_s15   ;;  %s1971_s15 = sphi %s2008_s15, %s2594_s15   ;;  %s1967_s14 = sphi %s2006_s14, %s2593_s14   ;;  %s1963_s13 = sphi %s2004_s13, %s2592_s13   ;;  %s1959_s12 = sphi %s2002_s12, %s2591_s12  }
   0x7   : > { %p40_p0 = scmp.ne.s32.totalorder %s1963_s13, %s1959_s12  ;;  %p2575_p1 = scmp.eq.s32.totalorder %s2023_s16, 0 }
   0x8   : > { %p112_p3 = scmp.eq.s32.totalorder %s1406_s17, 1  ;;  %p1407_p5 = scmp.ge.s32.totalorder %s1971_s15, 1 }
   0x9   : > { %p2032_p4 = por %p2575_p1, %p40_p0  ;;  %p119_p7 = scmp.lt.s32.totalorder %s1971_s15, 3 }
   0xa   : > { %p2037_p6 = por %p112_p3, %p40_p0  ;;  %s1973_s21 = smov [#allocation5]  }
   0xb   : > { %s2578_s18 = scalar_select %p2032_p4, 1, 0 }
   0xc   : > { %s2579_s19 = scalar_select %p2037_p6, 1, 0 }
   0xd   : > { %p2042_p8 = pnand %p1407_p5, %p119_p7  ;;  %s131_s22 = sshll.u32 %s1973_s21, 4  ;;  %s2046_s22 = int_to_ptr.vmem [resolvable:$true] %s131_s22 }
   0xe   : > { %s2058_s24 = sadd.s32 1, %s1971_s15   ;;  %s27_s25 = sadd.s32 1, %s1967_s14 }
   0xf   : > { %s2580_s20 = scalar_select %p2042_p8, 1, 0 }
  0x10   : > { %p1756_p9 = pneg %p2042_p8  ;;  %s24_s26 = ssub.s32 %s1971_s15, %s2058_s24 }
  0x11   : > { %s1843_s29 = scalar_lea.hbm %s2572_s1, 4096 }
  0x12   : > { %p2053_p11 = pnand %p1756_p9, %p2575_p1  ;;  %p1844_p12 = scmp.ne.s32.totalorder %s2572_s1, %s1843_s29 }
  0x13   : > { %p1850_p5 = scmp.lt.u32.totalorder %s1843_s29, %s2572_s1 }
  0x14   : > { %p1845_p13 = pneg %p2053_p11 }
  0x16   : > { %p1846_p0 = pnand %p1845_p13, %p1844_p12 }
  0x18   : > { %p1847_p3 = pneg %p1846_p0 }
  0x1a   : > { %p1852_p7 = pnand %p1850_p5, %p1847_p3 }
  0x1c   : > { %1855 = shalt.err (!%p1852_p7)
}
  0x1d   : > { %s1856_s7 = scalar_lea.vmem %s2046_s22, 4096  ;;  %p1864_p2 = scmp.lt.s32.totalorder %s2046_s22, %s2046_s22 }
  0x1e   : > { %p1857_p9 = scmp.ne.s32.totalorder %s2046_s22, %s1856_s7  ;;  %p1865_p6 = scmp.lt.s32.totalorder %s1856_s7, %s1856_s7 }
  0x20   : > { %p1859_p10 = pnand %p1857_p9, %p1845_p13  ;;  %p1866_p4 = por %p1865_p6, %p1864_p2 }
  0x22   : > { %p1860_p1 = pneg %p1859_p10 }
  0x24   : > { %p1867_p8 = pnand %p1866_p4, %p1860_p1 }
  0x26   : > { %1870 = shalt.err (!%p1867_p8)
}
  0x27   : > { %s1974_s8 = smov 256   ;;  %s1975_s9 = smov 16  }
  0x28   : > { %1759 = dma.hbm_to_vmem [thread:$0]  (!%p2053_p11), %s2572_s1, 4096, %s2046_s22, [#allocation6], %s1974_s8, %s1974_s8, %s1975_s9  }
  0x29   : > { %p25_p2 = scmp.eq.s32.totalorder %s24_s26, 0  ;;  %p34_p1 = scmp.ne.s32.totalorder %s1967_s14, %s1963_s13 }
  0x2a   : > { %p35_p4 = scmp.eq.s32.totalorder %s1971_s15, 0  ;;  %p1769_p6 = scmp.lt.s32.totalorder %s1971_s15, 2 }
  0x2b   : > { %s2089_s17 = scalar_select %p25_p2, %s1967_s14, %s27_s25  }
  0x2c   : > { %p36_p8 = por %p35_p4, %p34_p1  ;;  %p2582_p10 = scmp.eq.s32.totalorder %s2023_s16, 1 }
  0x2d   : > { %s148_s27 = sand.u32 1, %s1967_s14   ;;  %s1458_s28 = sshll.u32 %s1971_s15, 12 }
  0x2e   : > { %p2093_p12 = por %p2582_p10, %p34_p1  ;;  %s1410_s29 = sshll.u32 %s148_s27, 8 }
  0x2f   : > { %s2102_s4 = scalar_lea.hbm %s2571_s0, %s1458_s28  ;;  %s152_s22 = scalar_lea.vmem [#allocation2], %s1410_s29 }
  0x30   : > { %s159_s25 = sshll.u32 %s152_s22, 4  ;;  %p2104_p11 = pnand %p1769_p6, %p36_p8  ;;  %s2108_s25 = int_to_ptr.vmem [resolvable:$true] %s159_s25 }
  0x31   : > { %s2110_s5 = scalar_lea.sflag [#allocation3], %s148_s27  ;;  %s1871_s6 = scalar_lea.hbm %s2102_s4, 4096 }
  0x32   : > { %p1872_p13 = scmp.ne.s32.totalorder %s2102_s4, %s1871_s6  ;;  %p1873_p0 = pneg %p2104_p11 }
  0x33   : > { %s1876_s9 = scalar_lea.hbm %s2571_s0, 8192  ;;  %p1877_p7 = scmp.lt.u32.totalorder %s2102_s4, %s2571_s0 }
  0x34   : > { %p1874_p3 = pnand %p1873_p0, %p1872_p13  ;;  %p1878_p9 = scmp.lt.u32.totalorder %s1876_s9, %s1871_s6 }
  0x35   : > { %p1880_p1 = scmp.lt.u32.totalorder %s1871_s6, %s2102_s4 }
  0x36   : > { %p1875_p5 = pneg %p1874_p3  ;;  %p1879_p2 = por %p1878_p9, %p1877_p7 }
  0x38   : > { %p1881_p4 = por %p1880_p1, %p1879_p2 }
  0x3a   : > { %p1882_p6 = pnand %p1881_p4, %p1875_p5 }
  0x3c   : > { %1885 = shalt.err (!%p1882_p6)
}
  0x3d   : > { %s1886_s27 = scalar_lea.vmem %s2108_s25, 4096  ;;  %s1976_s28 = smov [#allocation2]  }
  0x3e   : > { %p1887_p8 = scmp.ne.s32.totalorder %s2108_s25, %s1886_s27  ;;  %s1891_s29 = sshll.u32 %s1976_s28, 4  ;;  %s1892_s29 = int_to_ptr.vmem [resolvable:$false] %s1891_s29 }
  0x3f   : > { %s1893_s23 = scalar_lea.vmem %s1892_s29, 8192  ;;  %p1894_p3 = scmp.lt.s32.totalorder %s2108_s25, %s1892_s29 }
  0x40   : > { %p1889_p10 = pnand %p1887_p8, %p1873_p0  ;;  %p1895_p7 = scmp.lt.s32.totalorder %s1893_s23, %s1886_s27 }
  0x42   : > { %p1890_p13 = pneg %p1889_p10  ;;  %p1896_p9 = por %p1895_p7, %p1894_p3 }
  0x44   : > { %p1897_p2 = pnand %p1896_p9, %p1890_p13 }
  0x46   : > { %1900 = shalt.err (!%p1897_p2)
}
  0x47   : > { %s1977_s30 = smov 128   ;;  %s1978_s22 = smov 8  }
  0x48   : > { %1763 = dma.hbm_to_vmem [thread:$0]  (!%p2104_p11), %s2102_s4, 4096, %s2108_s25, %s2110_s5, %s1977_s30, %s1977_s30, %s1978_s22  }
  0x49   : > { %p2585_p0 = scmp.ne.s32.totalorder %s2580_s20, 0 }
  0x4a   : > { %s2141_s6 = sand.u32 (!%p2585_p0), 1, %s1963_s13   ;;  %p2586_p5 = scmp.ne.s32.totalorder (!%p2585_p0), %s2578_s18, 0 }
  0x4b   : > { %171 = sbr.rel (%p2585_p0) target bundleno = 471 (0x1d7), region = 32  ;;  %s1414_s7 = sshll.u32 (!%p2585_p0), %s2141_s6, 8 }
  0x4c   : > { %s174_s8 = scalar_lea.sflag (!%p2585_p0), [#allocation3], %s2141_s6  ;;  %s2145_s9 = scalar_lea.vmem (!%p2585_p0), [#allocation2], %s1414_s7 }
  0x52   : > { %1946 = dma.done.wait (%p2586_p5), %s174_s8, 4096  }
  0x53   : > { %1948 = vsyncadd (%p2586_p5), %s174_s8, 4294963200  ;;  %p2587_p11 = scmp.eq.s32.totalorder %s2023_s16, 0 }
  0x55   : > { %1950 = dma.done.wait (%p2587_p11), [#allocation6], 4096   ;;  %p2588_p1 = pmov %p2587_p11 }
  0x56   : > { %v1811_v0 = vld [vmem:[#allocation5] ss:$16 sps:$4 sm:$0xff]   ;;  %v1812_v1 = vld [vmem:[#allocation5 + $0x4] ss:$16 sps:$4 sm:$0xff]   ;;  %v206_v12 = vld [vmem:[%s2145_s9 + $0x8] sm:$0xff]  ;;  %s1416_s18 = sshll.u32 %s2141_s6, 10 }
  0x57   : > { %1952 = vsyncadd (%p2588_p1), [#allocation6], 4294963200  ;;  %1556 = vmatprep.subr.bf16.mxu0 %v1811_v0  ;;  %v1813_v2 = vld [vmem:[#allocation5 + $0x20] ss:$16 sps:$4 sm:$0xff]   ;;  %1604 = vmatprep.subr.bf16.mxu1 %v1812_v1  ;;  %v1814_v3 = vld [vmem:[#allocation5 + $0x24] ss:$16 sps:$4 sm:$0xff]  }
  0x58   : > { %1557 = vmatpush3.bf16.msra.mxu0 %v1811_v0  ;;  %1605 = vmatpush3.bf16.msra.mxu1 %v1812_v1  ;;  %v1815_v4 = vld [vmem:[#allocation5 + $0x40] ss:$16 sps:$4 sm:$0xff]   ;;  %v1816_v5 = vld [vmem:[#allocation5 + $0x44] ss:$16 sps:$4 sm:$0xff]   ;;  %v208_v20 = vld [vmem:[%s2145_s9 + $0x18] sm:$0xff]  ;;  %s2255_s5 = scalar_lea.vmem [#allocation7], %s1416_s18 }
  0x59   : > { %1558 = vmatprep.subr.bf16.mxu0 %v1813_v2  ;;  %1606 = vmatprep.subr.bf16.mxu1 %v1814_v3  ;;  %v1817_v6 = vld [vmem:[#allocation5 + $0x60] ss:$16 sps:$4 sm:$0xff]   ;;  %v1818_v7 = vld [vmem:[#allocation5 + $0x64] ss:$16 sps:$4 sm:$0xff]   ;;  %v1827_v21 = vld [vmem:[#allocation5 + $0x8] ss:$16 sps:$4 sm:$0xff]  }
  0x5a   : > { %v1819_v8 = vld [vmem:[#allocation5 + $0x80] ss:$16 sps:$4 sm:$0xff]   ;;  %v1820_v9 = vld [vmem:[#allocation5 + $0x84] ss:$16 sps:$4 sm:$0xff]   ;;  %v1828_v22 = vld [vmem:[#allocation5 + $0xc] ss:$16 sps:$4 sm:$0xff]  }
  0x5b   : > { %v1821_v10 = vld [vmem:[#allocation5 + $0xa0] ss:$16 sps:$4 sm:$0xff]   ;;  %v1822_v13 = vld [vmem:[#allocation5 + $0xa4] ss:$16 sps:$4 sm:$0xff]   ;;  %v210_v24 = vld [vmem:[%s2145_s9 + $0x28] sm:$0xff]  ;;  %s1459_s29 = sshll.u32 %s2023_s16, 14 }
  0x5c   : > { %1559 = vmatpush3.bf16.msra.mxu0 %v1813_v2  ;;  %1607 = vmatpush3.bf16.msra.mxu1 %v1814_v3  ;;  %v205_v11 = vld [vmem:[%s2145_s9] sm:$0xff]  ;;  %v207_v19 = vld [vmem:[%s2145_s9 + $0x10] sm:$0xff]  ;;  %v1829_v28 = vld [vmem:[#allocation5 + $0x28] ss:$16 sps:$4 sm:$0xff]   ;;  %s1323_s23 = sshll.u32 %s2255_s5, 4  ;;  %s2519_s22 = scalar_lea.hbm %s2574_s3, %s1459_s29  ;;  %s2521_s23 = int_to_ptr.vmem [resolvable:$true] %s1323_s23 }
  0x5d   : > { %1560 = vmatprep.subr.bf16.mxu0 %v1815_v4  ;;  %1608 = vmatprep.subr.bf16.mxu1 %v1816_v5  ;;  %v2157_v14 = vpack.c.bf16 %v206_v12, %v205_v11  ;;  %v1823_v15 = vld [vmem:[#allocation5 + $0xc0] ss:$16 sps:$4 sm:$0xff]   ;;  %v1824_v16 = vld [vmem:[#allocation5 + $0xc4] ss:$16 sps:$4 sm:$0xff]   ;;  %v2165_v25 = vpack.c.bf16 %v208_v20, %v207_v19  ;;  %v1830_v29 = vld [vmem:[#allocation5 + $0x2c] ss:$16 sps:$4 sm:$0xff]  }
  0x5e   : > { %v1825_v17 = vld [vmem:[#allocation5 + $0xe0] ss:$16 sps:$4 sm:$0xff]   ;;  %v1826_v18 = vld [vmem:[#allocation5 + $0xe4] ss:$16 sps:$4 sm:$0xff]   ;;  %v212_v30 = vld [vmem:[%s2145_s9 + $0x38] sm:$0xff]  ;;  %s1310_s7 = scalar_lea.sflag [#allocation4], %s2141_s6 }
  0x5f   : > { %1572 = vmatprep.mubr.bf16.mxu0 %v2157_v14  ;;  %1620 = vmatprep.mubr.bf16.mxu1 %v2157_v14  ;;  %v209_v23 = vld [vmem:[%s2145_s9 + $0x20] sm:$0xff]  ;;  %v211_v27 = vld [vmem:[%s2145_s9 + $0x30] sm:$0xff]  ;;  %v214_v32 = vld [vmem:[%s2145_s9 + $0x48] sm:$0xff]  ;;  %s1901_s8 = scalar_lea.vmem %s2521_s23, 16384 }
  0x60   : > { %1561 = vmatpush3.bf16.msra.mxu0 %v1815_v4  ;;  %1609 = vmatpush3.bf16.msra.mxu1 %v1816_v5  ;;  %v2167_v26 = vpack.c.bf16 %v210_v24, %v209_v23  ;;  %v213_v31 = vld [vmem:[%s2145_s9 + $0x40] sm:$0xff]  ;;  %v1831_v33 = vld [vmem:[#allocation5 + $0x48] ss:$16 sps:$4 sm:$0xff]   ;;  %v1832_v34 = vld [vmem:[#allocation5 + $0x4c] ss:$16 sps:$4 sm:$0xff]   ;;  %v2177_v35 = vpack.c.bf16 %v212_v30, %v211_v27  ;;  %p1902_p4 = scmp.ne.s32.totalorder %s2521_s23, %s1901_s8 }
  0x61   : > { %1562 = vmatprep.subr.bf16.mxu0 %v1817_v6  ;;  %1610 = vmatprep.subr.bf16.mxu1 %v1818_v7  ;;  %v2179_v36 = vpack.c.bf16 %v214_v32, %v213_v31  ;;  %v1833_v37 = vld [vmem:[#allocation5 + $0x68] ss:$16 sps:$4 sm:$0xff]   ;;  %v1834_v38 = vld [vmem:[#allocation5 + $0x6c] ss:$16 sps:$4 sm:$0xff]   ;;  %v215_v39 = vld [vmem:[%s2145_s9 + $0x50] sm:$0xff] }
  0x62   : > { %v216_v40 = vld [vmem:[%s2145_s9 + $0x58] sm:$0xff]  ;;  %v217_v41 = vld [vmem:[%s2145_s9 + $0x60] sm:$0xff]  ;;  %v218_v42 = vld [vmem:[%s2145_s9 + $0x68] sm:$0xff]  ;;  %p1903_p6 = pnand %p1902_p4, %p2093_p12 }
  0x63   : > { %v1835_v43 = vld [vmem:[#allocation5 + $0x88] ss:$16 sps:$4 sm:$0xff]   ;;  %v2189_v44 = vpack.c.bf16 %v216_v40, %v215_v39  ;;  %v1836_v45 = vld [vmem:[#allocation5 + $0x8c] ss:$16 sps:$4 sm:$0xff]   ;;  %v2191_v46 = vpack.c.bf16 %v218_v42, %v217_v41  ;;  %v219_v49 = vld [vmem:[%s2145_s9 + $0x70] sm:$0xff] }
  0x64   : > { %1563 = vmatpush3.bf16.msra.mxu0 %v1817_v6  ;;  %1611 = vmatpush3.bf16.msra.mxu1 %v1818_v7  ;;  %v1837_v47 = vld [vmem:[#allocation5 + $0xa8] ss:$16 sps:$4 sm:$0xff]   ;;  %v1838_v48 = vld [vmem:[#allocation5 + $0xac] ss:$16 sps:$4 sm:$0xff]   ;;  %v221_v51 = vld [vmem:[%s2145_s9 + $0x80] sm:$0xff]  ;;  %p1904_p8 = pneg %p1903_p6 }
  0x65   : > { %1564 = vmatprep.subr.bf16.mxu0 %v1819_v8  ;;  %1612 = vmatprep.subr.bf16.mxu1 %v1820_v9  ;;  %v220_v50 = vld [vmem:[%s2145_s9 + $0x78] sm:$0xff]  ;;  %v222_v52 = vld [vmem:[%s2145_s9 + $0x88] sm:$0xff]  ;;  %v223_v59 = vld [vmem:[%s2145_s9 + $0x90] sm:$0xff] }
  0x66   : > { %v1839_v53 = vld [vmem:[#allocation5 + $0xc8] ss:$16 sps:$4 sm:$0xff]   ;;  %v2201_v54 = vpack.c.bf16 %v220_v50, %v219_v49  ;;  %v1840_v55 = vld [vmem:[#allocation5 + $0xcc] ss:$16 sps:$4 sm:$0xff]   ;;  %v2203_v56 = vpack.c.bf16 %v222_v52, %v221_v51  ;;  %v225_v61 = vld [vmem:[%s2145_s9 + $0xa0] sm:$0xff] }
  0x67   : > { %v1841_v57 = vld [vmem:[#allocation5 + $0xe8] ss:$16 sps:$4 sm:$0xff]   ;;  %v1842_v58 = vld [vmem:[#allocation5 + $0xec] ss:$16 sps:$4 sm:$0xff]   ;;  %v227_v1 = vld [vmem:[%s2145_s9 + $0xb0] sm:$0xff] }
  0x68   : > { %1565 = vmatpush3.bf16.msra.mxu0 %v1819_v8  ;;  %1613 = vmatpush3.bf16.msra.mxu1 %v1820_v9  ;;  %v224_v60 = vld [vmem:[%s2145_s9 + $0x98] sm:$0xff]  ;;  %v226_v62 = vld [vmem:[%s2145_s9 + $0xa8] sm:$0xff]  ;;  %v229_v3 = vld [vmem:[%s2145_s9 + $0xc0] sm:$0xff] }
  0x69   : > { %1566 = vmatprep.subr.bf16.mxu0 %v1821_v10  ;;  %1614 = vmatprep.subr.bf16.mxu1 %v1822_v13  ;;  %v246_v63 = vpack.c.bf16 %v224_v60, %v223_v59  ;;  %v247_v0 = vpack.c.bf16 %v226_v62, %v225_v61  ;;  %v228_v2 = vld [vmem:[%s2145_s9 + $0xb8] sm:$0xff]  ;;  %v230_v4 = vld [vmem:[%s2145_s9 + $0xc8] sm:$0xff]  ;;  %v231_v7 = vld [vmem:[%s2145_s9 + $0xd0] sm:$0xff] }
  0x6a   : > { %v248_v5 = vpack.c.bf16 %v228_v2, %v227_v1  ;;  %v249_v6 = vpack.c.bf16 %v230_v4, %v229_v3  ;;  %v232_v8 = vld [vmem:[%s2145_s9 + $0xd8] sm:$0xff]  ;;  %v233_v9 = vld [vmem:[%s2145_s9 + $0xe0] sm:$0xff] }
  0x6b   : > { %v250_v11 = vpack.c.bf16 %v232_v8, %v231_v7 }
  0x6c   : > { %1567 = vmatpush3.bf16.msra.mxu0 %v1821_v10  ;;  %1615 = vmatpush3.bf16.msra.mxu1 %v1822_v13  ;;  %v234_v10 = vld [vmem:[%s2145_s9 + $0xe8] sm:$0xff]  ;;  %v235_v13 = vld [vmem:[%s2145_s9 + $0xf0] sm:$0xff] }
  0x6d   : > { %1568 = vmatprep.subr.bf16.mxu0 %v1823_v15  ;;  %1616 = vmatprep.subr.bf16.mxu1 %v1824_v16  ;;  %v251_v12 = vpack.c.bf16 %v234_v10, %v233_v9 }
  0x70   : > { %1569 = vmatpush3.bf16.msra.mxu0 %v1823_v15  ;;  %1617 = vmatpush3.bf16.msra.mxu1 %v1824_v16  ;;  %v236_v15 = vld [vmem:[%s2145_s9 + $0xf8] sm:$0xff]  ;;  %s1979_s9 = smov [#allocation7]  }
  0x71   : > { %1570 = vmatprep.subr.bf16.mxu0 %v1825_v17  ;;  %1618 = vmatprep.subr.bf16.mxu1 %v1826_v18  ;;  %v252_v16 = vpack.c.bf16 %v236_v15, %v235_v13  ;;  %s1905_s18 = sshll.u32 %s1979_s9, 4  ;;  %s1906_s18 = int_to_ptr.vmem [resolvable:$false] %s1905_s18 }
  0x72   : > { %s1907_s20 = scalar_lea.vmem %s1906_s18, 32768  ;;  %p1908_p10 = scmp.lt.s32.totalorder %s2521_s23, %s1906_s18 }
  0x73   : > { %p1909_p13 = scmp.lt.s32.totalorder %s1907_s20, %s1901_s8 }
  0x74   : > { %1571 = vmatpush3.bf16.msra.mxu0 %v1825_v17  ;;  %1619 = vmatpush3.bf16.msra.mxu1 %v1826_v18  ;;  %v2250_v17 = vld [vmem:[%s2573_s2 + $0x1] ss:$0 sm:$0xff] }
  0x75   : > { %1652 = vmatprep.subr.bf16.mxu0 %v1827_v21  ;;  %1700 = vmatprep.subr.bf16.mxu1 %v1828_v22  ;;  %p1910_p3 = por %p1909_p13, %p1908_p10 }
  0x77   : > { %1573 = vmatmul.mubr.bf16.vlgmr.msra.gmra.mrb[0].mxu0 %v2165_v25  ;;  %1621 = vmatmul.mubr.bf16.vlgmr.msra.gmra.mrb[0].mxu1 %v2165_v25  ;;  %p1911_p7 = pnand %p1910_p3, %p1904_p8 }
  0x78   : > { %1653 = vmatpush3.bf16.msra.mxu0 %v1827_v21  ;;  %1701 = vmatpush3.bf16.msra.mxu1 %v1828_v22 }
  0x79   : > { %1576 = vmatprep.mubr.bf16.mxu0 %v2167_v26  ;;  %1624 = vmatprep.mubr.bf16.mxu1 %v2167_v26 }
  0x7a   : > { %1654 = vmatprep.subr.bf16.mxu0 %v1829_v28  ;;  %1702 = vmatprep.subr.bf16.mxu1 %v1830_v29 }
  0x7c   : > { %1655 = vmatpush3.bf16.msra.mxu0 %v1829_v28  ;;  %1703 = vmatpush3.bf16.msra.mxu1 %v1830_v29 }
  0x7d   : > { %1656 = vmatprep.subr.bf16.mxu0 %v1831_v33  ;;  %1704 = vmatprep.subr.bf16.mxu1 %v1832_v34 }
  0x7f   : > { %1577 = vmatmul.mubr.bf16.gmra.mrb[4].mxu0 %v2177_v35  ;;  %1625 = vmatmul.mubr.bf16.gmra.mrb[4].mxu1 %v2177_v35 }
  0x80   : > { %1580 = vmatprep.mubr.bf16.mxu0 %v2179_v36  ;;  %1628 = vmatprep.mubr.bf16.mxu1 %v2179_v36 }
  0x81   : > { %1657 = vmatpush3.bf16.msra.mxu0 %v1831_v33  ;;  %1705 = vmatpush3.bf16.msra.mxu1 %v1832_v34 }
  0x82   : > { %1658 = vmatprep.subr.bf16.mxu0 %v1833_v37  ;;  %1706 = vmatprep.subr.bf16.mxu1 %v1834_v38 }
  0x85   : > { %1659 = vmatpush3.bf16.msra.mxu0 %v1833_v37  ;;  %1707 = vmatpush3.bf16.msra.mxu1 %v1834_v38 }
  0x86   : > { %1660 = vmatprep.subr.bf16.mxu0 %v1835_v43  ;;  %1708 = vmatprep.subr.bf16.mxu1 %v1836_v45 }
  0x87   : > { %1581 = vmatmul.mubr.bf16.gmra.mrb[8].mxu0 %v2189_v44  ;;  %1629 = vmatmul.mubr.bf16.gmra.mrb[8].mxu1 %v2189_v44 }
  0x88   : > { %1584 = vmatprep.mubr.bf16.mxu0 %v2191_v46  ;;  %1632 = vmatprep.mubr.bf16.mxu1 %v2191_v46 }
  0x89   : > { %1661 = vmatpush3.bf16.msra.mxu0 %v1835_v43  ;;  %1709 = vmatpush3.bf16.msra.mxu1 %v1836_v45 }
  0x8a   : > { %1662 = vmatprep.subr.bf16.mxu0 %v1837_v47  ;;  %1710 = vmatprep.subr.bf16.mxu1 %v1838_v48 }
  0x8d   : > { %1663 = vmatpush3.bf16.msra.mxu0 %v1837_v47  ;;  %1711 = vmatpush3.bf16.msra.mxu1 %v1838_v48 }
  0x8e   : > { %1664 = vmatprep.subr.bf16.mxu0 %v1839_v53  ;;  %1712 = vmatprep.subr.bf16.mxu1 %v1840_v55 }
  0x8f   : > { %1585 = vmatmul.mubr.bf16.gmra.mrb[12].mxu0 %v2201_v54  ;;  %1633 = vmatmul.mubr.bf16.gmra.mrb[12].mxu1 %v2201_v54 }
  0x90   : > { %1588 = vmatprep.mubr.bf16.mxu0 %v2203_v56  ;;  %1636 = vmatprep.mubr.bf16.mxu1 %v2203_v56 }
  0x91   : > { %1665 = vmatpush3.bf16.msra.mxu0 %v1839_v53  ;;  %1713 = vmatpush3.bf16.msra.mxu1 %v1840_v55 }
  0x92   : > { %1666 = vmatprep.subr.bf16.mxu0 %v1841_v57  ;;  %1714 = vmatprep.subr.bf16.mxu1 %v1842_v58 }
  0x95   : > { %1667 = vmatpush3.bf16.msra.mxu0 %v1841_v57  ;;  %1715 = vmatpush3.bf16.msra.mxu1 %v1842_v58 }
  0x97   : > { %1589 = vmatmul.mubr.bf16.gmra.mrb[16].mxu0 %v246_v63  ;;  %1637 = vmatmul.mubr.bf16.gmra.mrb[16].mxu1 %v246_v63 }
  0x98   : > { %1592 = vmatprep.mubr.bf16.mxu0 %v247_v0  ;;  %1640 = vmatprep.mubr.bf16.mxu1 %v247_v0 }
  0x9f   : > { %1593 = vmatmul.mubr.bf16.gmra.mrb[20].mxu0 %v248_v5  ;;  %1641 = vmatmul.mubr.bf16.gmra.mrb[20].mxu1 %v248_v5 }
  0xa0   : > { %1596 = vmatprep.mubr.bf16.mxu0 %v249_v6  ;;  %1644 = vmatprep.mubr.bf16.mxu1 %v249_v6 }
  0xa7   : > { %1597 = vmatmul.mubr.bf16.gmra.mrb[24].mxu0 %v250_v11  ;;  %1645 = vmatmul.mubr.bf16.gmra.mrb[24].mxu1 %v250_v11 }
  0xa8   : > { %1600 = vmatprep.mubr.bf16.mxu0 %v251_v12  ;;  %1648 = vmatprep.mubr.bf16.mxu1 %v251_v12 }
  0xaf   : > { %1601 = vmatmul.mubr.bf16.gmra.mrb[28].mxu0 %v252_v16  ;;  %1649 = vmatmul.mubr.bf16.gmra.mrb[28].mxu1 %v252_v16 }
  0xb0   : > { %1668 = vmatprep.mubr.bf16.mxu0 %v2157_v14  ;;  %1716 = vmatprep.mubr.bf16.mxu1 %v2157_v14  ;;  %v2245_v14 = vld [vmem:[%s2573_s2] ss:$0 sm:$0xff] }
  0xb7   : > { %1669 = vmatmul.mubr.bf16.vlgmr.msra.gmra.mrb[32].mxu0 %v2165_v25  ;;  %1717 = vmatmul.mubr.bf16.vlgmr.msra.gmra.mrb[32].mxu1 %v2165_v25 }
  0xb8   : > { %1672 = vmatprep.mubr.bf16.mxu0 %v2167_v26  ;;  %1720 = vmatprep.mubr.bf16.mxu1 %v2167_v26 }
  0xbf   : > { %1673 = vmatmul.mubr.bf16.gmra.mrb[36].mxu0 %v2177_v35  ;;  %1721 = vmatmul.mubr.bf16.gmra.mrb[36].mxu1 %v2177_v35 }
  0xc0   : > { %1676 = vmatprep.mubr.bf16.mxu0 %v2179_v36  ;;  %1724 = vmatprep.mubr.bf16.mxu1 %v2179_v36 }
  0xc7   : > { %1677 = vmatmul.mubr.bf16.gmra.mrb[40].mxu0 %v2189_v44  ;;  %1725 = vmatmul.mubr.bf16.gmra.mrb[40].mxu1 %v2189_v44 }
  0xc8   : > { %1680 = vmatprep.mubr.bf16.mxu0 %v2191_v46  ;;  %1728 = vmatprep.mubr.bf16.mxu1 %v2191_v46 }
  0xcf   : > { %1681 = vmatmul.mubr.bf16.gmra.mrb[44].mxu0 %v2201_v54  ;;  %1729 = vmatmul.mubr.bf16.gmra.mrb[44].mxu1 %v2201_v54 }
  0xd0   : > { %1684 = vmatprep.mubr.bf16.mxu0 %v2203_v56  ;;  %1732 = vmatprep.mubr.bf16.mxu1 %v2203_v56 }
  0xd7   : > { %1685 = vmatmul.mubr.bf16.gmra.mrb[48].mxu0 %v246_v63  ;;  %1733 = vmatmul.mubr.bf16.gmra.mrb[48].mxu1 %v246_v63 }
  0xd8   : > { %1688 = vmatprep.mubr.bf16.mxu0 %v247_v0  ;;  %1736 = vmatprep.mubr.bf16.mxu1 %v247_v0 }
  0xdf   : > { %1689 = vmatmul.mubr.bf16.gmra.mrb[52].mxu0 %v248_v5  ;;  %1737 = vmatmul.mubr.bf16.gmra.mrb[52].mxu1 %v248_v5 }
  0xe0   : > { %1692 = vmatprep.mubr.bf16.mxu0 %v249_v6  ;;  %1740 = vmatprep.mubr.bf16.mxu1 %v249_v6 }
  0xe7   : > { %1693 = vmatmul.mubr.bf16.gmra.mrb[56].mxu0 %v250_v11  ;;  %1741 = vmatmul.mubr.bf16.gmra.mrb[56].mxu1 %v250_v11 }
  0xe8   : > { %1696 = vmatprep.mubr.bf16.mxu0 %v251_v12  ;;  %1744 = vmatprep.mubr.bf16.mxu1 %v251_v12 }
  0xef   : > { %1697 = vmatmul.mubr.bf16.gmra.mrb[60].mxu0 %v252_v16  ;;  %1745 = vmatmul.mubr.bf16.gmra.mrb[60].mxu1 %v252_v16 }
 0x14a   : > { %v1574_v18 = vpop.f32.mrb[0].mxu0  ;;  %v1622_v20 = vpop.f32.mrb[0].mxu1 }
 0x14b   : > { %v367_v19 = vadd.f32 %v1574_v18, %v2245_v14  ;;  %v358_v21 = vpop.f32.mrb[1].mxu0  ;;  %v631_v22 = vadd.f32 %v1622_v20, %v2250_v17  ;;  %v622_v24 = vpop.f32.mrb[1].mxu1 }
 0x14c   : > { %v359_v23 = vadd.f32 %v2245_v14, %v358_v21  ;;  %v1575_v25 = vpop.f32.mrb[2].mxu0  ;;  %v623_v26 = vadd.f32 %v2250_v17, %v622_v24  ;;  %v1623_v28 = vpop.f32.mrb[2].mxu1 }
 0x14d   : > { %487 = vst [vmem:[%s2255_s5 + $0x40] sm:$0xff] %v367_v19  ;;  %v370_v27 = vadd.f32 %v1575_v25, %v2245_v14  ;;  %v361_v29 = vpop.f32.mrb[3].mxu0  ;;  %751 = vst [vmem:[%s2255_s5 + $0x48] sm:$0xff] %v631_v22  ;;  %v634_v30 = vadd.f32 %v1623_v28, %v2250_v17  ;;  %v625_v32 = vpop.f32.mrb[3].mxu1 }
 0x14e   : > { %485 = vst [vmem:[%s2255_s5] sm:$0xff] %v359_v23  ;;  %v362_v31 = vadd.f32 %v2245_v14, %v361_v29  ;;  %749 = vst [vmem:[%s2255_s5 + $0x8] sm:$0xff] %v623_v26  ;;  %v626_v33 = vadd.f32 %v2250_v17, %v625_v32 }
 0x14f   : > { %488 = vst [vmem:[%s2255_s5 + $0x60] sm:$0xff] %v370_v27  ;;  %752 = vst [vmem:[%s2255_s5 + $0x68] sm:$0xff] %v634_v30 }
 0x150   : > { %486 = vst [vmem:[%s2255_s5 + $0x20] sm:$0xff] %v362_v31  ;;  %750 = vst [vmem:[%s2255_s5 + $0x28] sm:$0xff] %v626_v33 }
 0x152   : > { %v1578_v34 = vpop.f32.mrb[4].mxu0  ;;  %v1626_v36 = vpop.f32.mrb[4].mxu1 }
 0x153   : > { %v383_v35 = vadd.f32 %v1578_v34, %v2245_v14  ;;  %v374_v37 = vpop.f32.mrb[5].mxu0  ;;  %v647_v38 = vadd.f32 %v1626_v36, %v2250_v17  ;;  %v638_v40 = vpop.f32.mrb[5].mxu1 }
 0x154   : > { %v375_v39 = vadd.f32 %v2245_v14, %v374_v37  ;;  %v1579_v41 = vpop.f32.mrb[6].mxu0  ;;  %v639_v42 = vadd.f32 %v2250_v17, %v638_v40  ;;  %v1627_v44 = vpop.f32.mrb[6].mxu1 }
 0x155   : > { %491 = vst [vmem:[%s2255_s5 + $0xc0] sm:$0xff] %v383_v35  ;;  %v386_v43 = vadd.f32 %v1579_v41, %v2245_v14  ;;  %v377_v45 = vpop.f32.mrb[7].mxu0  ;;  %755 = vst [vmem:[%s2255_s5 + $0xc8] sm:$0xff] %v647_v38  ;;  %v650_v46 = vadd.f32 %v1627_v44, %v2250_v17  ;;  %v641_v48 = vpop.f32.mrb[7].mxu1 }
 0x156   : > { %489 = vst [vmem:[%s2255_s5 + $0x80] sm:$0xff] %v375_v39  ;;  %v378_v47 = vadd.f32 %v2245_v14, %v377_v45  ;;  %753 = vst [vmem:[%s2255_s5 + $0x88] sm:$0xff] %v639_v42  ;;  %v642_v49 = vadd.f32 %v2250_v17, %v641_v48 }
 0x157   : > { %492 = vst [vmem:[%s2255_s5 + $0xe0] sm:$0xff] %v386_v43  ;;  %756 = vst [vmem:[%s2255_s5 + $0xe8] sm:$0xff] %v650_v46 }
 0x158   : > { %490 = vst [vmem:[%s2255_s5 + $0xa0] sm:$0xff] %v378_v47  ;;  %754 = vst [vmem:[%s2255_s5 + $0xa8] sm:$0xff] %v642_v49 }
 0x15a   : > { %v1582_v50 = vpop.f32.mrb[8].mxu0  ;;  %v1630_v52 = vpop.f32.mrb[8].mxu1 }
 0x15b   : > { %v399_v51 = vadd.f32 %v1582_v50, %v2245_v14  ;;  %v390_v53 = vpop.f32.mrb[9].mxu0  ;;  %v663_v54 = vadd.f32 %v1630_v52, %v2250_v17  ;;  %v654_v56 = vpop.f32.mrb[9].mxu1 }
 0x15c   : > { %v391_v55 = vadd.f32 %v2245_v14, %v390_v53  ;;  %v1583_v57 = vpop.f32.mrb[10].mxu0  ;;  %v655_v58 = vadd.f32 %v2250_v17, %v654_v56  ;;  %v1631_v60 = vpop.f32.mrb[10].mxu1 }
 0x15d   : > { %495 = vst [vmem:[%s2255_s5 + $0x140] sm:$0xff] %v399_v51  ;;  %v402_v59 = vadd.f32 %v1583_v57, %v2245_v14  ;;  %v393_v61 = vpop.f32.mrb[11].mxu0  ;;  %759 = vst [vmem:[%s2255_s5 + $0x148] sm:$0xff] %v663_v54  ;;  %v666_v62 = vadd.f32 %v1631_v60, %v2250_v17  ;;  %v657_v0 = vpop.f32.mrb[11].mxu1 }
 0x15e   : > { %493 = vst [vmem:[%s2255_s5 + $0x100] sm:$0xff] %v391_v55  ;;  %v394_v63 = vadd.f32 %v2245_v14, %v393_v61  ;;  %757 = vst [vmem:[%s2255_s5 + $0x108] sm:$0xff] %v655_v58  ;;  %v658_v1 = vadd.f32 %v2250_v17, %v657_v0 }
 0x15f   : > { %496 = vst [vmem:[%s2255_s5 + $0x160] sm:$0xff] %v402_v59  ;;  %760 = vst [vmem:[%s2255_s5 + $0x168] sm:$0xff] %v666_v62 }
 0x160   : > { %494 = vst [vmem:[%s2255_s5 + $0x120] sm:$0xff] %v394_v63  ;;  %758 = vst [vmem:[%s2255_s5 + $0x128] sm:$0xff] %v658_v1 }
 0x162   : > { %v1586_v2 = vpop.f32.mrb[12].mxu0  ;;  %v1634_v4 = vpop.f32.mrb[12].mxu1 }
 0x163   : > { %v415_v3 = vadd.f32 %v1586_v2, %v2245_v14  ;;  %v406_v5 = vpop.f32.mrb[13].mxu0  ;;  %v679_v6 = vadd.f32 %v1634_v4, %v2250_v17  ;;  %v670_v8 = vpop.f32.mrb[13].mxu1 }
 0x164   : > { %v407_v7 = vadd.f32 %v2245_v14, %v406_v5  ;;  %v1587_v9 = vpop.f32.mrb[14].mxu0  ;;  %v671_v10 = vadd.f32 %v2250_v17, %v670_v8  ;;  %v1635_v12 = vpop.f32.mrb[14].mxu1 }
 0x165   : > { %499 = vst [vmem:[%s2255_s5 + $0x1c0] sm:$0xff] %v415_v3  ;;  %v418_v11 = vadd.f32 %v1587_v9, %v2245_v14  ;;  %v409_v13 = vpop.f32.mrb[15].mxu0  ;;  %763 = vst [vmem:[%s2255_s5 + $0x1c8] sm:$0xff] %v679_v6  ;;  %v682_v15 = vadd.f32 %v1635_v12, %v2250_v17  ;;  %v673_v18 = vpop.f32.mrb[15].mxu1 }
 0x166   : > { %497 = vst [vmem:[%s2255_s5 + $0x180] sm:$0xff] %v407_v7  ;;  %v410_v16 = vadd.f32 %v2245_v14, %v409_v13  ;;  %761 = vst [vmem:[%s2255_s5 + $0x188] sm:$0xff] %v671_v10  ;;  %v674_v19 = vadd.f32 %v2250_v17, %v673_v18 }
 0x167   : > { %500 = vst [vmem:[%s2255_s5 + $0x1e0] sm:$0xff] %v418_v11  ;;  %764 = vst [vmem:[%s2255_s5 + $0x1e8] sm:$0xff] %v682_v15 }
 0x168   : > { %498 = vst [vmem:[%s2255_s5 + $0x1a0] sm:$0xff] %v410_v16  ;;  %762 = vst [vmem:[%s2255_s5 + $0x1a8] sm:$0xff] %v674_v19 }
 0x16a   : > { %v1590_v20 = vpop.f32.mrb[16].mxu0  ;;  %v1638_v22 = vpop.f32.mrb[16].mxu1 }
 0x16b   : > { %v431_v21 = vadd.f32 %v1590_v20, %v2245_v14  ;;  %v422_v23 = vpop.f32.mrb[17].mxu0  ;;  %v695_v24 = vadd.f32 %v1638_v22, %v2250_v17  ;;  %v686_v26 = vpop.f32.mrb[17].mxu1  ;;  %v2384_v22 = vld [vmem:[%s2573_s2 + $0x2] ss:$0 sm:$0xff] }
 0x16c   : > { %v423_v25 = vadd.f32 %v2245_v14, %v422_v23  ;;  %v1591_v27 = vpop.f32.mrb[18].mxu0  ;;  %v687_v28 = vadd.f32 %v2250_v17, %v686_v26  ;;  %v1639_v30 = vpop.f32.mrb[18].mxu1 }
 0x16d   : > { %503 = vst [vmem:[%s2255_s5 + $0x240] sm:$0xff] %v431_v21  ;;  %v434_v29 = vadd.f32 %v1591_v27, %v2245_v14  ;;  %v425_v31 = vpop.f32.mrb[19].mxu0  ;;  %767 = vst [vmem:[%s2255_s5 + $0x248] sm:$0xff] %v695_v24  ;;  %v698_v32 = vadd.f32 %v1639_v30, %v2250_v17  ;;  %v689_v34 = vpop.f32.mrb[19].mxu1 }
 0x16e   : > { %501 = vst [vmem:[%s2255_s5 + $0x200] sm:$0xff] %v423_v25  ;;  %v426_v33 = vadd.f32 %v2245_v14, %v425_v31  ;;  %765 = vst [vmem:[%s2255_s5 + $0x208] sm:$0xff] %v687_v28  ;;  %v690_v35 = vadd.f32 %v2250_v17, %v689_v34 }
 0x16f   : > { %504 = vst [vmem:[%s2255_s5 + $0x260] sm:$0xff] %v434_v29  ;;  %768 = vst [vmem:[%s2255_s5 + $0x268] sm:$0xff] %v698_v32 }
 0x170   : > { %502 = vst [vmem:[%s2255_s5 + $0x220] sm:$0xff] %v426_v33  ;;  %766 = vst [vmem:[%s2255_s5 + $0x228] sm:$0xff] %v690_v35 }
 0x172   : > { %v1594_v36 = vpop.f32.mrb[20].mxu0  ;;  %v1642_v38 = vpop.f32.mrb[20].mxu1 }
 0x173   : > { %v447_v37 = vadd.f32 %v1594_v36, %v2245_v14  ;;  %v438_v39 = vpop.f32.mrb[21].mxu0  ;;  %v711_v40 = vadd.f32 %v1642_v38, %v2250_v17  ;;  %v702_v42 = vpop.f32.mrb[21].mxu1 }
 0x174   : > { %v439_v41 = vadd.f32 %v2245_v14, %v438_v39  ;;  %v1595_v43 = vpop.f32.mrb[22].mxu0  ;;  %v703_v44 = vadd.f32 %v2250_v17, %v702_v42  ;;  %v1643_v46 = vpop.f32.mrb[22].mxu1 }
 0x175   : > { %507 = vst [vmem:[%s2255_s5 + $0x2c0] sm:$0xff] %v447_v37  ;;  %v450_v45 = vadd.f32 %v1595_v43, %v2245_v14  ;;  %v441_v47 = vpop.f32.mrb[23].mxu0  ;;  %771 = vst [vmem:[%s2255_s5 + $0x2c8] sm:$0xff] %v711_v40  ;;  %v714_v48 = vadd.f32 %v1643_v46, %v2250_v17  ;;  %v705_v50 = vpop.f32.mrb[23].mxu1 }
 0x176   : > { %505 = vst [vmem:[%s2255_s5 + $0x280] sm:$0xff] %v439_v41  ;;  %v442_v49 = vadd.f32 %v2245_v14, %v441_v47  ;;  %769 = vst [vmem:[%s2255_s5 + $0x288] sm:$0xff] %v703_v44  ;;  %v706_v51 = vadd.f32 %v2250_v17, %v705_v50 }
 0x177   : > { %508 = vst [vmem:[%s2255_s5 + $0x2e0] sm:$0xff] %v450_v45  ;;  %772 = vst [vmem:[%s2255_s5 + $0x2e8] sm:$0xff] %v714_v48 }
 0x178   : > { %506 = vst [vmem:[%s2255_s5 + $0x2a0] sm:$0xff] %v442_v49  ;;  %770 = vst [vmem:[%s2255_s5 + $0x2a8] sm:$0xff] %v706_v51 }
 0x17a   : > { %v1598_v52 = vpop.f32.mrb[24].mxu0  ;;  %v1646_v54 = vpop.f32.mrb[24].mxu1 }
 0x17b   : > { %v463_v53 = vadd.f32 %v1598_v52, %v2245_v14  ;;  %v454_v55 = vpop.f32.mrb[25].mxu0  ;;  %v727_v56 = vadd.f32 %v1646_v54, %v2250_v17  ;;  %v718_v58 = vpop.f32.mrb[25].mxu1 }
 0x17c   : > { %v455_v57 = vadd.f32 %v2245_v14, %v454_v55  ;;  %v1599_v59 = vpop.f32.mrb[26].mxu0  ;;  %v719_v60 = vadd.f32 %v2250_v17, %v718_v58  ;;  %v1647_v62 = vpop.f32.mrb[26].mxu1 }
 0x17d   : > { %511 = vst [vmem:[%s2255_s5 + $0x340] sm:$0xff] %v463_v53  ;;  %v466_v61 = vadd.f32 %v1599_v59, %v2245_v14  ;;  %v457_v63 = vpop.f32.mrb[27].mxu0  ;;  %775 = vst [vmem:[%s2255_s5 + $0x348] sm:$0xff] %v727_v56  ;;  %v730_v0 = vadd.f32 %v1647_v62, %v2250_v17  ;;  %v721_v2 = vpop.f32.mrb[27].mxu1 }
 0x17e   : > { %509 = vst [vmem:[%s2255_s5 + $0x300] sm:$0xff] %v455_v57  ;;  %v458_v1 = vadd.f32 %v2245_v14, %v457_v63  ;;  %773 = vst [vmem:[%s2255_s5 + $0x308] sm:$0xff] %v719_v60  ;;  %v722_v3 = vadd.f32 %v2250_v17, %v721_v2 }
 0x17f   : > { %512 = vst [vmem:[%s2255_s5 + $0x360] sm:$0xff] %v466_v61  ;;  %776 = vst [vmem:[%s2255_s5 + $0x368] sm:$0xff] %v730_v0 }
 0x180   : > { %510 = vst [vmem:[%s2255_s5 + $0x320] sm:$0xff] %v458_v1  ;;  %774 = vst [vmem:[%s2255_s5 + $0x328] sm:$0xff] %v722_v3 }
 0x182   : > { %v1602_v4 = vpop.f32.mrb[28].mxu0  ;;  %v1650_v6 = vpop.f32.mrb[28].mxu1 }
 0x183   : > { %v479_v5 = vadd.f32 %v1602_v4, %v2245_v14  ;;  %v470_v7 = vpop.f32.mrb[29].mxu0  ;;  %v743_v8 = vadd.f32 %v1650_v6, %v2250_v17  ;;  %v734_v10 = vpop.f32.mrb[29].mxu1 }
 0x184   : > { %v471_v9 = vadd.f32 %v2245_v14, %v470_v7  ;;  %v1603_v11 = vpop.f32.mrb[30].mxu0  ;;  %v735_v12 = vadd.f32 %v2250_v17, %v734_v10  ;;  %v1651_v15 = vpop.f32.mrb[30].mxu1 }
 0x185   : > { %515 = vst [vmem:[%s2255_s5 + $0x3c0] sm:$0xff] %v479_v5  ;;  %v482_v13 = vadd.f32 %v1603_v11, %v2245_v14  ;;  %v473_v16 = vpop.f32.mrb[31].mxu0  ;;  %779 = vst [vmem:[%s2255_s5 + $0x3c8] sm:$0xff] %v743_v8  ;;  %v746_v18 = vadd.f32 %v1651_v15, %v2250_v17  ;;  %v737_v20 = vpop.f32.mrb[31].mxu1 }
 0x186   : > { %513 = vst [vmem:[%s2255_s5 + $0x380] sm:$0xff] %v471_v9  ;;  %v474_v19 = vadd.f32 %v2245_v14, %v473_v16  ;;  %777 = vst [vmem:[%s2255_s5 + $0x388] sm:$0xff] %v735_v12  ;;  %v738_v21 = vadd.f32 %v2250_v17, %v737_v20  ;;  %v2390_v14 = vld [vmem:[%s2573_s2 + $0x3] ss:$0 sm:$0xff] }
 0x187   : > { %516 = vst [vmem:[%s2255_s5 + $0x3e0] sm:$0xff] %v482_v13  ;;  %780 = vst [vmem:[%s2255_s5 + $0x3e8] sm:$0xff] %v746_v18 }
 0x188   : > { %514 = vst [vmem:[%s2255_s5 + $0x3a0] sm:$0xff] %v474_v19  ;;  %778 = vst [vmem:[%s2255_s5 + $0x3a8] sm:$0xff] %v738_v21 }
 0x18a   : > { %v1670_v23 = vpop.f32.mrb[32].mxu0  ;;  %v1718_v25 = vpop.f32.mrb[32].mxu1 }
 0x18b   : > { %v895_v24 = vadd.f32 %v1670_v23, %v2384_v22  ;;  %v886_v17 = vpop.f32.mrb[33].mxu0  ;;  %v1159_v26 = vadd.f32 %v1718_v25, %v2390_v14  ;;  %v1150_v28 = vpop.f32.mrb[33].mxu1 }
 0x18c   : > { %v887_v27 = vadd.f32 %v2384_v22, %v886_v17  ;;  %v1671_v29 = vpop.f32.mrb[34].mxu0  ;;  %v1151_v30 = vadd.f32 %v2390_v14, %v1150_v28  ;;  %v1719_v32 = vpop.f32.mrb[34].mxu1 }
 0x18d   : > { %1015 = vst [vmem:[%s2255_s5 + $0x50] sm:$0xff] %v895_v24  ;;  %v898_v31 = vadd.f32 %v1671_v29, %v2384_v22  ;;  %v889_v33 = vpop.f32.mrb[35].mxu0  ;;  %1279 = vst [vmem:[%s2255_s5 + $0x58] sm:$0xff] %v1159_v26  ;;  %v1162_v34 = vadd.f32 %v1719_v32, %v2390_v14  ;;  %v1153_v36 = vpop.f32.mrb[35].mxu1 }
 0x18e   : > { %1013 = vst [vmem:[%s2255_s5 + $0x10] sm:$0xff] %v887_v27  ;;  %v890_v35 = vadd.f32 %v2384_v22, %v889_v33  ;;  %1277 = vst [vmem:[%s2255_s5 + $0x18] sm:$0xff] %v1151_v30  ;;  %v1154_v37 = vadd.f32 %v2390_v14, %v1153_v36 }
 0x18f   : > { %1016 = vst [vmem:[%s2255_s5 + $0x70] sm:$0xff] %v898_v31  ;;  %1280 = vst [vmem:[%s2255_s5 + $0x78] sm:$0xff] %v1162_v34 }
 0x190   : > { %1014 = vst [vmem:[%s2255_s5 + $0x30] sm:$0xff] %v890_v35  ;;  %1278 = vst [vmem:[%s2255_s5 + $0x38] sm:$0xff] %v1154_v37 }
 0x192   : > { %v1674_v38 = vpop.f32.mrb[36].mxu0  ;;  %v1722_v40 = vpop.f32.mrb[36].mxu1 }
 0x193   : > { %v911_v39 = vadd.f32 %v1674_v38, %v2384_v22  ;;  %v902_v41 = vpop.f32.mrb[37].mxu0  ;;  %v1175_v42 = vadd.f32 %v1722_v40, %v2390_v14  ;;  %v1166_v44 = vpop.f32.mrb[37].mxu1 }
 0x194   : > { %v903_v43 = vadd.f32 %v2384_v22, %v902_v41  ;;  %v1675_v45 = vpop.f32.mrb[38].mxu0  ;;  %v1167_v46 = vadd.f32 %v2390_v14, %v1166_v44  ;;  %v1723_v48 = vpop.f32.mrb[38].mxu1 }
 0x195   : > { %1019 = vst [vmem:[%s2255_s5 + $0xd0] sm:$0xff] %v911_v39  ;;  %v914_v47 = vadd.f32 %v1675_v45, %v2384_v22  ;;  %v905_v49 = vpop.f32.mrb[39].mxu0  ;;  %1283 = vst [vmem:[%s2255_s5 + $0xd8] sm:$0xff] %v1175_v42  ;;  %v1178_v50 = vadd.f32 %v1723_v48, %v2390_v14  ;;  %v1169_v52 = vpop.f32.mrb[39].mxu1 }
 0x196   : > { %1017 = vst [vmem:[%s2255_s5 + $0x90] sm:$0xff] %v903_v43  ;;  %v906_v51 = vadd.f32 %v2384_v22, %v905_v49  ;;  %1281 = vst [vmem:[%s2255_s5 + $0x98] sm:$0xff] %v1167_v46  ;;  %v1170_v53 = vadd.f32 %v2390_v14, %v1169_v52 }
 0x197   : > { %1020 = vst [vmem:[%s2255_s5 + $0xf0] sm:$0xff] %v914_v47  ;;  %1284 = vst [vmem:[%s2255_s5 + $0xf8] sm:$0xff] %v1178_v50 }
 0x198   : > { %1018 = vst [vmem:[%s2255_s5 + $0xb0] sm:$0xff] %v906_v51  ;;  %1282 = vst [vmem:[%s2255_s5 + $0xb8] sm:$0xff] %v1170_v53 }
 0x19a   : > { %v1678_v54 = vpop.f32.mrb[40].mxu0  ;;  %v1726_v56 = vpop.f32.mrb[40].mxu1 }
 0x19b   : > { %v927_v55 = vadd.f32 %v1678_v54, %v2384_v22  ;;  %v918_v57 = vpop.f32.mrb[41].mxu0  ;;  %v1191_v58 = vadd.f32 %v1726_v56, %v2390_v14  ;;  %v1182_v60 = vpop.f32.mrb[41].mxu1 }
 0x19c   : > { %v919_v59 = vadd.f32 %v2384_v22, %v918_v57  ;;  %v1679_v61 = vpop.f32.mrb[42].mxu0  ;;  %v1183_v62 = vadd.f32 %v2390_v14, %v1182_v60  ;;  %v1727_v0 = vpop.f32.mrb[42].mxu1 }
 0x19d   : > { %1023 = vst [vmem:[%s2255_s5 + $0x150] sm:$0xff] %v927_v55  ;;  %v930_v63 = vadd.f32 %v1679_v61, %v2384_v22  ;;  %v921_v1 = vpop.f32.mrb[43].mxu0  ;;  %1287 = vst [vmem:[%s2255_s5 + $0x158] sm:$0xff] %v1191_v58  ;;  %v1194_v2 = vadd.f32 %v1727_v0, %v2390_v14  ;;  %v1185_v4 = vpop.f32.mrb[43].mxu1 }
 0x19e   : > { %1021 = vst [vmem:[%s2255_s5 + $0x110] sm:$0xff] %v919_v59  ;;  %v922_v3 = vadd.f32 %v2384_v22, %v921_v1  ;;  %1285 = vst [vmem:[%s2255_s5 + $0x118] sm:$0xff] %v1183_v62  ;;  %v1186_v5 = vadd.f32 %v2390_v14, %v1185_v4 }
 0x19f   : > { %1024 = vst [vmem:[%s2255_s5 + $0x170] sm:$0xff] %v930_v63  ;;  %1288 = vst [vmem:[%s2255_s5 + $0x178] sm:$0xff] %v1194_v2 }
 0x1a0   : > { %1022 = vst [vmem:[%s2255_s5 + $0x130] sm:$0xff] %v922_v3  ;;  %1286 = vst [vmem:[%s2255_s5 + $0x138] sm:$0xff] %v1186_v5 }
 0x1a2   : > { %v1682_v6 = vpop.f32.mrb[44].mxu0  ;;  %v1730_v8 = vpop.f32.mrb[44].mxu1 }
 0x1a3   : > { %v943_v7 = vadd.f32 %v1682_v6, %v2384_v22  ;;  %v934_v9 = vpop.f32.mrb[45].mxu0  ;;  %v1207_v10 = vadd.f32 %v1730_v8, %v2390_v14  ;;  %v1198_v12 = vpop.f32.mrb[45].mxu1 }
 0x1a4   : > { %v935_v11 = vadd.f32 %v2384_v22, %v934_v9  ;;  %v1683_v13 = vpop.f32.mrb[46].mxu0  ;;  %v1199_v15 = vadd.f32 %v2390_v14, %v1198_v12  ;;  %v1731_v18 = vpop.f32.mrb[46].mxu1 }
 0x1a5   : > { %1027 = vst [vmem:[%s2255_s5 + $0x1d0] sm:$0xff] %v943_v7  ;;  %v946_v16 = vadd.f32 %v1683_v13, %v2384_v22  ;;  %v937_v19 = vpop.f32.mrb[47].mxu0  ;;  %1291 = vst [vmem:[%s2255_s5 + $0x1d8] sm:$0xff] %v1207_v10  ;;  %v1210_v20 = vadd.f32 %v1731_v18, %v2390_v14  ;;  %v1201_v23 = vpop.f32.mrb[47].mxu1 }
 0x1a6   : > { %1025 = vst [vmem:[%s2255_s5 + $0x190] sm:$0xff] %v935_v11  ;;  %v938_v21 = vadd.f32 %v2384_v22, %v937_v19  ;;  %1289 = vst [vmem:[%s2255_s5 + $0x198] sm:$0xff] %v1199_v15  ;;  %v1202_v24 = vadd.f32 %v2390_v14, %v1201_v23 }
 0x1a7   : > { %1028 = vst [vmem:[%s2255_s5 + $0x1f0] sm:$0xff] %v946_v16  ;;  %1292 = vst [vmem:[%s2255_s5 + $0x1f8] sm:$0xff] %v1210_v20 }
 0x1a8   : > { %1026 = vst [vmem:[%s2255_s5 + $0x1b0] sm:$0xff] %v938_v21  ;;  %1290 = vst [vmem:[%s2255_s5 + $0x1b8] sm:$0xff] %v1202_v24 }
 0x1aa   : > { %v1686_v25 = vpop.f32.mrb[48].mxu0  ;;  %v1734_v26 = vpop.f32.mrb[48].mxu1 }
 0x1ab   : > { %v959_v17 = vadd.f32 %v1686_v25, %v2384_v22  ;;  %v950_v27 = vpop.f32.mrb[49].mxu0  ;;  %v1223_v28 = vadd.f32 %v1734_v26, %v2390_v14  ;;  %v1214_v30 = vpop.f32.mrb[49].mxu1 }
 0x1ac   : > { %v951_v29 = vadd.f32 %v2384_v22, %v950_v27  ;;  %v1687_v31 = vpop.f32.mrb[50].mxu0  ;;  %v1215_v32 = vadd.f32 %v2390_v14, %v1214_v30  ;;  %v1735_v34 = vpop.f32.mrb[50].mxu1 }
 0x1ad   : > { %1031 = vst [vmem:[%s2255_s5 + $0x250] sm:$0xff] %v959_v17  ;;  %v962_v33 = vadd.f32 %v1687_v31, %v2384_v22  ;;  %v953_v35 = vpop.f32.mrb[51].mxu0  ;;  %1295 = vst [vmem:[%s2255_s5 + $0x258] sm:$0xff] %v1223_v28  ;;  %v1226_v36 = vadd.f32 %v1735_v34, %v2390_v14  ;;  %v1217_v38 = vpop.f32.mrb[51].mxu1 }
 0x1ae   : > { %1029 = vst [vmem:[%s2255_s5 + $0x210] sm:$0xff] %v951_v29  ;;  %v954_v37 = vadd.f32 %v2384_v22, %v953_v35  ;;  %1293 = vst [vmem:[%s2255_s5 + $0x218] sm:$0xff] %v1215_v32  ;;  %v1218_v39 = vadd.f32 %v2390_v14, %v1217_v38 }
 0x1af   : > { %1032 = vst [vmem:[%s2255_s5 + $0x270] sm:$0xff] %v962_v33  ;;  %1296 = vst [vmem:[%s2255_s5 + $0x278] sm:$0xff] %v1226_v36 }
 0x1b0   : > { %1030 = vst [vmem:[%s2255_s5 + $0x230] sm:$0xff] %v954_v37  ;;  %1294 = vst [vmem:[%s2255_s5 + $0x238] sm:$0xff] %v1218_v39 }
 0x1b2   : > { %v1690_v40 = vpop.f32.mrb[52].mxu0  ;;  %v1738_v42 = vpop.f32.mrb[52].mxu1 }
 0x1b3   : > { %v975_v41 = vadd.f32 %v1690_v40, %v2384_v22  ;;  %v966_v43 = vpop.f32.mrb[53].mxu0  ;;  %v1239_v44 = vadd.f32 %v1738_v42, %v2390_v14  ;;  %v1230_v46 = vpop.f32.mrb[53].mxu1 }
 0x1b4   : > { %v967_v45 = vadd.f32 %v2384_v22, %v966_v43  ;;  %v1691_v47 = vpop.f32.mrb[54].mxu0  ;;  %v1231_v48 = vadd.f32 %v2390_v14, %v1230_v46  ;;  %v1739_v50 = vpop.f32.mrb[54].mxu1 }
 0x1b5   : > { %1035 = vst [vmem:[%s2255_s5 + $0x2d0] sm:$0xff] %v975_v41  ;;  %v978_v49 = vadd.f32 %v1691_v47, %v2384_v22  ;;  %v969_v51 = vpop.f32.mrb[55].mxu0  ;;  %1299 = vst [vmem:[%s2255_s5 + $0x2d8] sm:$0xff] %v1239_v44  ;;  %v1242_v52 = vadd.f32 %v1739_v50, %v2390_v14  ;;  %v1233_v54 = vpop.f32.mrb[55].mxu1 }
 0x1b6   : > { %1033 = vst [vmem:[%s2255_s5 + $0x290] sm:$0xff] %v967_v45  ;;  %v970_v53 = vadd.f32 %v2384_v22, %v969_v51  ;;  %1297 = vst [vmem:[%s2255_s5 + $0x298] sm:$0xff] %v1231_v48  ;;  %v1234_v55 = vadd.f32 %v2390_v14, %v1233_v54 }
 0x1b7   : > { %1036 = vst [vmem:[%s2255_s5 + $0x2f0] sm:$0xff] %v978_v49  ;;  %1300 = vst [vmem:[%s2255_s5 + $0x2f8] sm:$0xff] %v1242_v52 }
 0x1b8   : > { %1034 = vst [vmem:[%s2255_s5 + $0x2b0] sm:$0xff] %v970_v53  ;;  %1298 = vst [vmem:[%s2255_s5 + $0x2b8] sm:$0xff] %v1234_v55 }
 0x1ba   : > { %v1694_v56 = vpop.f32.mrb[56].mxu0  ;;  %v1742_v58 = vpop.f32.mrb[56].mxu1 }
 0x1bb   : > { %v991_v57 = vadd.f32 %v1694_v56, %v2384_v22  ;;  %v982_v59 = vpop.f32.mrb[57].mxu0  ;;  %v1255_v60 = vadd.f32 %v1742_v58, %v2390_v14  ;;  %v1246_v62 = vpop.f32.mrb[57].mxu1 }
 0x1bc   : > { %v983_v61 = vadd.f32 %v2384_v22, %v982_v59  ;;  %v1695_v63 = vpop.f32.mrb[58].mxu0  ;;  %v1247_v0 = vadd.f32 %v2390_v14, %v1246_v62  ;;  %v1743_v2 = vpop.f32.mrb[58].mxu1 }
 0x1bd   : > { %1039 = vst [vmem:[%s2255_s5 + $0x350] sm:$0xff] %v991_v57  ;;  %v994_v1 = vadd.f32 %v1695_v63, %v2384_v22  ;;  %v985_v3 = vpop.f32.mrb[59].mxu0  ;;  %1303 = vst [vmem:[%s2255_s5 + $0x358] sm:$0xff] %v1255_v60  ;;  %v1258_v4 = vadd.f32 %v1743_v2, %v2390_v14  ;;  %v1249_v6 = vpop.f32.mrb[59].mxu1 }
 0x1be   : > { %1037 = vst [vmem:[%s2255_s5 + $0x310] sm:$0xff] %v983_v61  ;;  %v986_v5 = vadd.f32 %v2384_v22, %v985_v3  ;;  %1301 = vst [vmem:[%s2255_s5 + $0x318] sm:$0xff] %v1247_v0  ;;  %v1250_v7 = vadd.f32 %v2390_v14, %v1249_v6 }
 0x1bf   : > { %1040 = vst [vmem:[%s2255_s5 + $0x370] sm:$0xff] %v994_v1  ;;  %1304 = vst [vmem:[%s2255_s5 + $0x378] sm:$0xff] %v1258_v4 }
 0x1c0   : > { %1038 = vst [vmem:[%s2255_s5 + $0x330] sm:$0xff] %v986_v5  ;;  %1302 = vst [vmem:[%s2255_s5 + $0x338] sm:$0xff] %v1250_v7 }
 0x1c2   : > { %v1698_v8 = vpop.f32.mrb[60].mxu0  ;;  %v1746_v10 = vpop.f32.mrb[60].mxu1 }
 0x1c3   : > { %v1007_v9 = vadd.f32 %v1698_v8, %v2384_v22  ;;  %v998_v11 = vpop.f32.mrb[61].mxu0  ;;  %v1271_v12 = vadd.f32 %v1746_v10, %v2390_v14  ;;  %v1262_v15 = vpop.f32.mrb[61].mxu1 }
 0x1c4   : > { %v999_v13 = vadd.f32 %v2384_v22, %v998_v11  ;;  %v1699_v16 = vpop.f32.mrb[62].mxu0  ;;  %v1263_v18 = vadd.f32 %v2390_v14, %v1262_v15  ;;  %v1747_v20 = vpop.f32.mrb[62].mxu1 }
 0x1c5   : > { %1043 = vst [vmem:[%s2255_s5 + $0x3d0] sm:$0xff] %v1007_v9  ;;  %v1010_v19 = vadd.f32 %v1699_v16, %v2384_v22  ;;  %v1001_v21 = vpop.f32.mrb[63].mxu0  ;;  %1307 = vst [vmem:[%s2255_s5 + $0x3d8] sm:$0xff] %v1271_v12  ;;  %v1274_v23 = vadd.f32 %v1747_v20, %v2390_v14  ;;  %v1265_v25 = vpop.f32.mrb[63].mxu1 }
 0x1c6   : > { %1041 = vst [vmem:[%s2255_s5 + $0x390] sm:$0xff] %v999_v13  ;;  %v1002_v24 = vadd.f32 %v2384_v22, %v1001_v21  ;;  %1305 = vst [vmem:[%s2255_s5 + $0x398] sm:$0xff] %v1263_v18  ;;  %v1266_v17 = vadd.f32 %v2390_v14, %v1265_v25 }
 0x1c7   : > { %1044 = vst [vmem:[%s2255_s5 + $0x3f0] sm:$0xff] %v1010_v19  ;;  %1308 = vst [vmem:[%s2255_s5 + $0x3f8] sm:$0xff] %v1274_v23 }
 0x1c8   : > { %1042 = vst [vmem:[%s2255_s5 + $0x3b0] sm:$0xff] %v1002_v24  ;;  %1306 = vst [vmem:[%s2255_s5 + $0x3b8] sm:$0xff] %v1266_v17 }
 0x1c9   : > { %1914 = shalt.err (!%p1911_p7)
}
 0x1ca   : > { %s1915_s4 = scalar_lea.hbm %s2519_s22, 16384  ;;  %s1919_s5 = scalar_lea.hbm %s2574_s3, 32768 }
 0x1cb   : > { %p1916_p9 = scmp.ne.s32.totalorder %s2519_s22, %s1915_s4  ;;  %p1920_p5 = scmp.lt.u32.totalorder %s2519_s22, %s2574_s3 }
 0x1cc   : > { %p1921_p11 = scmp.lt.u32.totalorder %s1919_s5, %s1915_s4  ;;  %p1923_p4 = scmp.lt.u32.totalorder %s1915_s4, %s2519_s22 }
 0x1cd   : > { %p1917_p2 = pnand %p1916_p9, %p2093_p12 }
 0x1ce   : > { %p1922_p1 = por %p1921_p11, %p1920_p5 }
 0x1cf   : > { %p1918_p0 = pneg %p1917_p2 }
 0x1d0   : > { %p1924_p6 = por %p1923_p4, %p1922_p1 }
 0x1d2   : > { %p1925_p8 = pnand %p1924_p6, %p1918_p0 }
 0x1d4   : > { %1928 = shalt.err (!%p1925_p8)
}
 0x1d5   : > { %s1980_s27 = smov 512   ;;  %s1981_s28 = smov 32  }
 0x1d6   : > { %1754 = dma.vmem_to_hbm [thread:$0]  (%p2093_p12), %s2521_s23, 16384, %s2519_s22, %s1310_s7, %s1980_s27, %s1980_s27, %s1981_s28  }
 0x1d7 PF: > { %s1338_s29 = sand.u32 1, %s1959_s12   ;;  %p2589_p10 = scmp.ne.s32.totalorder %s2579_s19, 0 }
 0x1d8   : > { %p2590_p13 = scmp.ge.s32.totalorder %s1971_s15, 2  ;;  %s1339_s16 = scalar_lea.sflag [#allocation4], %s1338_s29 }
 0x1da   : > { %p1765_p3 = pnand %p2590_p13, %p2589_p10 }
 0x1dc   : > { %1954 = dma.done.wait (!%p1765_p3), %s1339_s16, 16384  }
 0x1dd   : > { %1956 = vsyncadd (!%p1765_p3), %s1339_s16, 4294950912  ;;  %p17_p7 = scmp.ge.s32.totalorder %s2058_s24, 4   ;;  %s2591_s12 = smov %s1963_s13 }
 0x1de   : > { %s2592_s13 = smov %s1967_s14  ;;  %s2593_s14 = smov %s2089_s17 }
 0x1df   : > { %s2594_s15 = smov %s2058_s24  ;;  %19 = sbr.rel (!%p17_p7) target bundleno = 6 (0x6), region = 81 }
 0x1e6   :  { %1344 = vsyncpa [#allocation3], 1 }
 0x1e7   :  { %1346 = vsyncpa [#allocation3 + $0x1], 1 }
 0x1e8   :  { %1347 = vsyncpa [#allocation6], 1 }
 0x1e9   :  { %1348 = vsyncpa [#allocation4], 1 }
 0x1ea   :  { %1350 = vsyncpa [#allocation4 + $0x1], 1 }

</bundles_post_ra>
